<compile_context>
chip_gen: v7x
topology: tpu7x:2x2x1
jax: 0.10.0
libtpu: 0.0.40
codegen_flags: <defaults>
</compile_context>

<pallas_src>
import functools
import math

import jax
import jax.numpy as jnp
from jax.experimental import pallas as pl
from jax.experimental.pallas import tpu as pltpu


# ---------------------------------------------------------------------------
# Kernels
# ---------------------------------------------------------------------------
def _pe_add_kernel(x_ref, pe_ref, o_ref):
    # x_ref: (Bt, Lt) block; pe_ref: (1, Lt) block, broadcast over batch rows.
    y = x_ref[...].astype(jnp.float32) + pe_ref[...]
    o_ref[...] = y.astype(o_ref.dtype)


def _pe_add_dropout_kernel(x_ref, pe_ref, bits_ref, o_ref, *, threshold, scale):
    # Inverted dropout: keep iff bits >= threshold (P(keep) = 1 - p), scale 1/(1-p).
    # Integer-threshold compare on raw uint32 bits (no uint32->float convert).
    y = x_ref[...].astype(jnp.float32) + pe_ref[...]
    keep = bits_ref[...] >= jnp.uint32(threshold)
    o_ref[...] = jnp.where(keep, y * jnp.float32(scale),
                           jnp.float32(0.0)).astype(o_ref.dtype)


# ---------------------------------------------------------------------------
# Parameter construction (deterministic, matches __init__)
# ---------------------------------------------------------------------------
def make_pe(dmodel, max_len=None):
    if max_len is None:
        max_len = dmodel
    # row i: sin(linspace(0, 4*(1+i)*pi, dmodel))
    i = jnp.arange(max_len, dtype=jnp.float32)[:, None]               # (max_len, 1)
    denom = float(max(dmodel - 1, 1))                                  # guard dmodel==1
    t = jnp.arange(dmodel, dtype=jnp.float32)[None, :] / denom         # (1, dmodel)
    return jnp.sin(4.0 * (1.0 + i) * math.pi * t).astype(jnp.float32)  # (max_len, dmodel)


# ---------------------------------------------------------------------------
# Tiling
# ---------------------------------------------------------------------------
_TARGET_BLOCK_BYTES = 2 * 1024 * 1024  # ~2 MiB blocks: near HBM roofline, fits all gens.


def _choose_tiles(batch, flat_len, itemsize, target_bytes=_TARGET_BLOCK_BYTES):
    """Pick (batch_tile, lane_tile) obeying the TPU (8, 128) block constraints."""
    row_bytes = flat_len * itemsize
    # Lane tile: a multiple of 128, or the full (untiled) lane extent.
    if flat_len % 128 == 0 and row_bytes > target_bytes:
        lane_tile = max(128, ((target_bytes // itemsize) // 128) * 128)
        lane_tile = min(lane_tile, flat_len)
    else:
        lane_tile = flat_len
    # Batch tile: a multiple of 8, or the full batch.
    rows = max(1, target_bytes // max(1, lane_tile * itemsize))
    if rows >= batch or batch <= 8:
        batch_tile = batch
    else:
        batch_tile = max(8, (rows // 8) * 8)
    return batch_tile, lane_tile


# ---------------------------------------------------------------------------
# Wrapper
# ---------------------------------------------------------------------------
def pos_encodings_sin(x, pe, *, dropout_p=0.1, training=False, rng_key=None):
    """x: (batch, seq, dmodel); pe: (max_len, dmodel) float32. Output dtype = x.dtype."""
    batch, seq, dmodel = x.shape
    assert seq <= pe.shape[0], "seq exceeds max_len of positional encodings"
    flat_len = seq * dmodel

    x2 = x.reshape(batch, flat_len)                                   # lane-dense layout
    pe2 = pe[:seq].astype(jnp.float32).reshape(1, flat_len)

    bt, lt = _choose_tiles(batch, flat_len, x.dtype.itemsize)
    grid = (pl.cdiv(flat_len, lt), pl.cdiv(batch, bt))                # lane-tile axis SLOW

    x_spec = pl.BlockSpec((bt, lt), lambda l, b: (b, l))
    pe_spec = pl.BlockSpec((1, lt), lambda l, b: (0, l))              # resident across b
    out_spec = pl.BlockSpec((bt, lt), lambda l, b: (b, l))
    out_shape = jax.ShapeDtypeStruct((batch, flat_len), x.dtype)

    use_dropout = training and dropout_p > 0.0

    # VMEM budget: double-buffered x / out / pe (+ bits) plus slack, with headroom.
    blk = bt * lt
    needed = 2 * (2 * blk * x.dtype.itemsize + lt * 4
                  + (blk * 4 if use_dropout else 0))
    vmem_limit = int(min(max(needed + (4 << 20), 32 << 20), 48 << 20))
    cparams = pltpu.CompilerParams(
        dimension_semantics=("parallel", "parallel"),
        vmem_limit_bytes=vmem_limit,
    )

    if not use_dropout:
        out2 = pl.pallas_call(
            _pe_add_kernel,
            out_shape=out_shape,
            grid_spec=pltpu.PrefetchScalarGridSpec(
                num_scalar_prefetch=0,
                grid=grid,
                in_specs=[x_spec, pe_spec],
                out_specs=out_spec,
            ),
            compiler_params=cparams,
        )(x2, pe2)
        return out2.reshape(batch, seq, dmodel)

    # Training-mode dropout (inverted dropout; RNG stream is JAX-native, not torch's).
    if rng_key is None:
        rng_key = jax.random.PRNGKey(0)
    # TODO(synk): on real TPUs, generating the bits in-kernel with
    # pltpu.prng_random_bits would halve HBM read traffic; the external-bits path is
    # kept because the hardware PRNG primitives do not lower in interpret mode.
    bits = jax.random.bits(rng_key, (batch, flat_len), dtype=jnp.uint32)
    threshold = int(min(round(float(dropout_p) * (2.0 ** 32)), 2 ** 32 - 1))
    scale = 1.0 / (1.0 - float(dropout_p))
    bits_spec = pl.BlockSpec((bt, lt), lambda l, b: (b, l))

    out2 = pl.pallas_call(
        functools.partial(_pe_add_dropout_kernel, threshold=threshold, scale=scale),
        out_shape=out_shape,
        grid_spec=pltpu.PrefetchScalarGridSpec(
            num_scalar_prefetch=0,
            grid=grid,
            in_specs=[x_spec, pe_spec, bits_spec],
            out_specs=out_spec,
        ),
        compiler_params=cparams,
    )(x2, pe2, bits)
    return out2.reshape(batch, seq, dmodel)


# ---------------------------------------------------------------------------
# Demo / self-test
# ---------------------------------------------------------------------------
if __name__ == "__main__":
    dmodel = 32
    max_len = dmodel      # default in __init__
    batch, seq = 2, 8     # seq <= max_len

    key = jax.random.PRNGKey(0)
    kx, kd = jax.random.split(key)
    x = jax.random.normal(kx, (batch, seq, dmodel), dtype=jnp.float32)
    pe = make_pe(dmodel, max_len)

    # eval-mode forward (dropout is identity)
    out = jax.block_until_ready(
        pos_encodings_sin(x, pe, dropout_p=0.1, training=False))

    # pure-JAX reference mirroring the torch forward (transpose / broadcast / transpose)
    x_t = jnp.transpose(x, (1, 0, 2))                       # (seq, batch, dmodel)
    ref = jnp.transpose(x_t + pe[:seq][:, None, :], (1, 0, 2))
    assert out.shape == (batch, seq, dmodel)
    assert jnp.allclose(out, ref, atol=1e-6), "eval-path mismatch vs reference"

    # training-mode forward (inverted dropout; kept entries == ref / (1-p), dropped == 0)
    p = 0.1
    out_tr = jax.block_until_ready(
        pos_encodings_sin(x, pe, dropout_p=p, training=True, rng_key=kd))
    assert out_tr.shape == out.shape
    kept = jnp.abs(out_tr) > 0
    err = jnp.where(kept, jnp.abs(out_tr * (1.0 - p) - ref), 0.0)
    assert float(jnp.max(err)) < 1e-4, "training-path mismatch vs reference"

    print("KERNEL_OK")
</pallas_src>

<mosaic_0001>
module attributes {stable_mosaic.version = 11 : i64} {
  func.func @_pe_add_kernel(%arg0: i32, %arg1: i32, %arg2: memref<2x256xf32, #tpu.memory_space<vmem>>, %arg3: memref<1x256xf32, #tpu.memory_space<vmem>>, %arg4: memref<2x256xf32, #tpu.memory_space<vmem>>) attributes {dimension_semantics = [#tpu.dimension_semantics<parallel>, #tpu.dimension_semantics<parallel>], iteration_bounds = array<i64: 1, 1>, scalar_prefetch = 0 : i64, scratch_operands = 0 : i64, tpu.core_type = #tpu.core_type<tc>, window_params = [{transform_indices = @transform_0, window_bounds = array<i64: 2, 256>}, {transform_indices = @transform_1, window_bounds = array<i64: 1, 256>}, {transform_indices = @transform_2, window_bounds = array<i64: 2, 256>}]} {
    %c0 = arith.constant 0 : index
    %c0_0 = arith.constant 0 : index
    %0 = vector.load %arg2[%c0, %c0_0] : memref<2x256xf32, #tpu.memory_space<vmem>>, vector<2x256xf32>
    %c0_1 = arith.constant 0 : index
    %c0_2 = arith.constant 0 : index
    %1 = vector.load %arg3[%c0_1, %c0_2] : memref<1x256xf32, #tpu.memory_space<vmem>>, vector<1x256xf32>
    %2 = vector.broadcast %1 : vector<1x256xf32> to vector<2x256xf32>
    %3 = arith.addf %0, %2 : vector<2x256xf32>
    %c0_3 = arith.constant 0 : index
    %c0_4 = arith.constant 0 : index
    %4 = vector.load %arg4[%c0_3, %c0_4] : memref<2x256xf32, #tpu.memory_space<vmem>>, vector<2x256xf32>
    tpu.vector_store %arg4[%c0_3, %c0_4], %3 {strides = array<i32>} : memref<2x256xf32, #tpu.memory_space<vmem>>, vector<2x256xf32>,
    return
  }
  func.func @transform_0(%arg0: i32, %arg1: i32) -> (i32, i32) {
    %c0_i32 = arith.constant 0 : i32
    return %arg1, %arg0 : i32, i32
  }
  func.func @transform_1(%arg0: i32, %arg1: i32) -> (i32, i32) {
    %c0_i32 = arith.constant 0 : i32
    %c0_i32_0 = arith.constant 0 : i32
    return %c0_i32, %arg0 : i32, i32
  }
  func.func @transform_2(%arg0: i32, %arg1: i32) -> (i32, i32) {
    %c0_i32 = arith.constant 0 : i32
    return %arg1, %arg0 : i32, i32
  }
}

</mosaic_0001>

<bundles_post_ra>
// kernel: tpu_custom_call.1
= control target key start
LH: loop header
LB: loop body
LE: loop exit
PB: predicated region body
PF: predicated region fallthrough
CT: control target
= control target key end

     0   :  { %7 = vsyncpa [#allocation3], 0  ;;  %s157_s0 = inlined_call_operand.hbm [shape: f32[2,256], index: 0, kind: input, shape index: {}]   ;;  %s158_s1 = inlined_call_operand.vmem [shape: f32[1,256], index: 1, kind: input, shape index: {}]   ;;  %s159_s2 = inlined_call_operand.hbm [shape: f32[2,256], index: 2, kind: output, shape index: {}]  }
   0x1   :  { %8 = vsyncpa [#allocation4], 0  ;;  %s112_s9 = smov [#allocation2]   ;;  %s64_s13 = scalar_lea.hbm %s157_s0, 64 }
   0x2   :  { %s15_s10 = sshll.u32 %s112_s9, 4  ;;  %p65_p0 = scmp.ne.s32.totalorder %s157_s0, %s64_s13  ;;  %s16_s10 = int_to_ptr.vmem [resolvable:$true] %s15_s10 }
   0x3   :  { %p68_p1 = scmp.lt.u32.totalorder %s64_s13, %s157_s0 }
   0x5   :  { %p70_p2 = pnand %p68_p1, %p65_p0 }
   0x7   :  { %73 = shalt.err (!%p70_p2)
}
   0x8   :  { %s74_s18 = scalar_lea.vmem %s16_s10, 64  ;;  %p79_p4 = scmp.lt.s32.totalorder %s16_s10, %s16_s10 }
   0x9   :  { %p75_p3 = scmp.ne.s32.totalorder %s16_s10, %s74_s18  ;;  %p80_p5 = scmp.lt.s32.totalorder %s74_s18, %s74_s18 }
   0xb   :  { %p81_p6 = por %p80_p5, %p79_p4 }
   0xd   :  { %p82_p7 = pnand %p81_p6, %p75_p3 }
   0xf   :  { %85 = shalt.err (!%p82_p7)
}
  0x10   :  { %18 = dma.hbm_to_vmem [thread:$0]  %s157_s0, 64, %s16_s10, [#allocation3]  }
  0x11   :  { %108 = dma.done.wait [#allocation3], 64  }
  0x12   :  { %109 = vsyncadd [#allocation3], 4294967232  ;;  %v27_v0 = vlaneseq  ;;  %v113_v1 = vmov 1983009808   ;;  %v25_v7 = vld [vmem:[%s158_s1] sm:$0x3] }
  0x13   :  { %v37_v2 = vunpack.c.l.s4 %v113_v1  ;;  %v24_v12 = vld [vmem:[#allocation2] sm:$0xf]  ;;  %s114_s23 = smov [#allocation5]  }
  0x14   :  { %v28_v3 = vshrl.u32 %v27_v0, 7  ;;  %s52_s0 = sshll.u32 %s114_s23, 4  ;;  %s53_s0 = int_to_ptr.vmem [resolvable:$true] %s52_s0 }
  0x15   :  { %v38_v6 = vunpack.c.0.s8 %v37_v2  ;;  %s86_s24 = scalar_lea.vmem %s53_s0, 64  ;;  %p91_p9 = scmp.lt.s32.totalorder %s53_s0, %s53_s0 }
  0x16   :  { %v29_v4 = vsub.s32 0, %v28_v3  ;;  %v33_v5 = vsub.s32 1, %v28_v3  ;;  %p87_p8 = scmp.ne.s32.totalorder %s53_s0, %s86_s24  ;;  %p92_p10 = scmp.lt.s32.totalorder %s86_s24, %s86_s24 }
  0x17   :  { %v41_v10 = vsub.s32 %v38_v6, %v28_v3 }
  0x18   :  { %v30_v8 = vrot.slane %v25_v7, %v29_v4  ;;  %v34_v9 = vrot.slane %v25_v7, %v33_v5  ;;  %p93_p11 = por %p92_p10, %p91_p9 }
  0x1a   :  { %v35_v11 = vcombine.low %v30_v8, %v34_v9  ;;  %p94_p12 = pnand %p93_p11, %p87_p8 }
  0x1c   :  { %v42_v13 = vrot.slane %v35_v11, %v41_v10 }
  0x1e   :  { %v44_v14 = vadd.f32 %v42_v13, %v24_v12 }
  0x20   :  { %45 = vst [vmem:[#allocation5] sm:$0xf] %v44_v14 }
  0x21   :  { %97 = shalt.err (!%p94_p12)
}
  0x22   :  { %s98_s26 = scalar_lea.hbm %s159_s2, 64 }
  0x23   :  { %p99_p13 = scmp.ne.s32.totalorder %s159_s2, %s98_s26  ;;  %p102_p0 = scmp.lt.u32.totalorder %s98_s26, %s159_s2 }
  0x25   :  { %p104_p1 = pnand %p102_p0, %p99_p13 }
  0x27   :  { %107 = shalt.err (!%p104_p1)
}
  0x28   :  { %55 = dma.vmem_to_hbm [thread:$0]  %s53_s0, 64, %s159_s2, [#allocation4]  }
  0x29   :  { %110 = dma.done.wait [#allocation4], 64  }
  0x2a   :  { %111 = vsyncadd [#allocation4], 4294967232 }
  0x2b   :  { %59 = vsyncpa [#allocation3], 1 }
  0x2c   :  { %60 = vsyncpa [#allocation4], 1 }

</bundles_post_ra>
